<compile_context>
chip_gen: v5e
topology: v5e:2x2
jax: 0.10.0
libtpu: 0.0.40
codegen_flags: <defaults>
</compile_context>

<pallas_src>
import jax
import jax.numpy as jnp
from jax.experimental import pallas as pl
from jax.experimental.pallas import tpu as pltpu


def _round_up(x, m):
    return ((x + m - 1) // m) * m


# ----------------------------------------------------------------------------
# Pallas kernel: 3-layer MLP on one batch tile, weights VMEM-resident.
#   obs_ref : [TB, obs_dim]  f32 (streamed)
#   act_ref : [TB, act_dim]  f32 (streamed)
#   w1_ref  : [obs_dim+act_dim, H] bf16     b1_ref : [1, H] f32
#   w2_ref  : [H, H]              bf16      b2_ref : [1, H] f32
#   w3_ref  : [1, H]              f32       b3_ref : [1, 1] f32 (SMEM)
#   out_ref : [1, TB] f32 (lane-dense)
#   x_scr   : [TB, obs_dim+act_dim] bf16 VMEM scratch (fused layer-1 input)
# ----------------------------------------------------------------------------
def _qfunction_kernel(obs_ref, act_ref, w1_ref, b1_ref, w2_ref, b2_ref,
                      w3_ref, b3_ref, out_ref, x_scr):
    obs_dim = obs_ref.shape[1]

    # Assemble the concatenated [TB, obs_dim+act_dim] bf16 input in VMEM
    # (in-kernel VPU cast; no wrapper astype / concat round-trip).
    x_scr[:, :obs_dim] = obs_ref[...].astype(jnp.bfloat16)
    x_scr[:, obs_dim:] = act_ref[...].astype(jnp.bfloat16)

    # Layer 1: single MXU pass over the fused K = obs_dim + act_dim.
    h1 = jnp.dot(x_scr[...], w1_ref[...], preferred_element_type=jnp.float32)
    h1 = jnp.maximum(h1 + b1_ref[...], 0.0)                     # f32 ReLU

    # Layer 2: bf16 matmul, f32 accumulate.
    h2 = jnp.dot(h1.astype(w2_ref.dtype), w2_ref[...],
                 preferred_element_type=jnp.float32)
    h2 = jnp.maximum(h2 + b2_ref[...], 0.0)                     # f32 ReLU

    # Layer 3: N=1 "matmul" -> VPU multiply + lane reduction (skip the MXU),
    # emitted as a lane-dense [1, TB] row (unmasked store).
    q = jnp.sum(h2 * w3_ref[...], axis=-1) + b3_ref[0, 0]       # [TB]
    out_ref[...] = q.reshape(1, -1).astype(out_ref.dtype)       # [1, TB]


def qfunction_forward(obs, action, params):
    """obs: [B, obs_dim], action: [B, action_dim] -> [B, 1] (f32)."""
    assert obs.shape[0] == action.shape[0]
    w1, b1, w2, b2, w3_row, b3 = params

    B, obs_dim = obs.shape
    act_dim = action.shape[1]
    in_dim = obs_dim + act_dim
    assert w1.shape[0] == in_dim

    # Batch tile: fill MXU rows (up to 512); round to 16 for bf16 sublane
    # packing on the tiny-batch path.
    # TODO(synk): on v6e with large B, TB=1024-2048 amortizes grid-step
    # overhead further; on v7x (64 MiB VMEM) keep TB <= 1024 and tile layer 2
    # over K / single-buffer resident weights once hidden >= 4096.
    TB = min(512, _round_up(B, 16))
    num_tiles = pl.cdiv(B, TB)

    # Weights / biases: same block every grid step -> stay VMEM-resident.
    resident = lambda a: pl.BlockSpec(a.shape, lambda i: (0,) * a.ndim)

    out = pl.pallas_call(
        _qfunction_kernel,
        out_shape=jax.ShapeDtypeStruct((num_tiles, TB), jnp.float32),
        grid=(num_tiles,),
        in_specs=[
            pl.BlockSpec((TB, obs_dim), lambda i: (i, 0)),   # obs tile (f32)
            pl.BlockSpec((TB, act_dim), lambda i: (i, 0)),   # action tile (f32)
            resident(w1),                                    # [in_dim, H] bf16
            resident(b1),                                    # [1, H] f32
            resident(w2),                                    # [H, H] bf16
            resident(b2),                                    # [1, H] f32
            resident(w3_row),                                # [1, H] f32
            pl.BlockSpec(memory_space=pltpu.MemorySpace.SMEM),  # b3 scalar
        ],
        out_specs=pl.BlockSpec((1, TB), lambda i: (i, 0)),   # lane-dense row
        scratch_shapes=[pltpu.VMEM((TB, in_dim), jnp.bfloat16)],
        compiler_params=pltpu.CompilerParams(
            dimension_semantics=("parallel",),
            vmem_limit_bytes=64 * 1024 * 1024),
    )(obs, action, w1, b1, w2, b2, w3_row, b3)

    # Lane-dense (num_tiles, TB) -> (B, 1); tiny reshape/slice on B floats.
    return out.reshape(-1)[:B].reshape(B, 1)


# ----------------------------------------------------------------------------
# Deterministic parameter init mirroring weight_init():
#   Linear.weight <- orthogonal (gain=1),  Linear.bias <- 0
# Weights are returned already transposed to [in, out], cast to bf16 once
# (matmul operands), and zero-padded so hidden is a multiple of 128.
# ----------------------------------------------------------------------------
def _orthogonal(key, out_features, in_features):
    """Orthogonal [out, in] matrix, like nn.init.orthogonal_."""
    rows, cols = out_features, in_features
    transpose = rows < cols
    r, c = (cols, rows) if transpose else (rows, cols)
    a = jax.random.normal(key, (r, c), dtype=jnp.float32)
    q, rr = jnp.linalg.qr(a)
    q = q * jnp.sign(jnp.diagonal(rr))[None, :]   # unique / deterministic
    return q.T if transpose else q                # [out, in]


def init_qfunction_params(key, obs_dim, action_dim, hidden_dim):
    k1, k2, k3 = jax.random.split(key, 3)
    in_dim = obs_dim + action_dim
    H = _round_up(hidden_dim, 128)                # lane/MXU-friendly hidden
    pad = H - hidden_dim

    w1 = _orthogonal(k1, hidden_dim, in_dim).T               # [in_dim, hidden]
    w1 = jnp.pad(w1, ((0, 0), (0, pad))).astype(jnp.bfloat16)  # [in_dim, H]
    b1 = jnp.zeros((1, H), jnp.float32)

    w2 = _orthogonal(k2, hidden_dim, hidden_dim).T           # [hidden, hidden]
    w2 = jnp.pad(w2, ((0, pad), (0, pad))).astype(jnp.bfloat16)  # [H, H]
    b2 = jnp.zeros((1, H), jnp.float32)

    w3_row = _orthogonal(k3, 1, hidden_dim)                  # [1, hidden]
    w3_row = jnp.pad(w3_row, ((0, 0), (0, pad)))             # [1, H] f32
    b3 = jnp.zeros((1, 1), jnp.float32)
    return (w1, b1, w2, b2, w3_row, b3)


# Pure-JAX f32 reference for the sanity check (padded columns are zero, so it
# matches the unpadded PyTorch trunk up to bf16 weight quantization).
def _ref_forward(obs, action, params):
    w1, b1, w2, b2, w3_row, b3 = params
    x = jnp.concatenate([obs, action], axis=1)
    h1 = jnp.maximum(x @ w1.astype(jnp.float32) + b1, 0.0)
    h2 = jnp.maximum(h1 @ w2.astype(jnp.float32) + b2, 0.0)
    return h2 @ w3_row.T + b3


if __name__ == "__main__":
    obs_dim, action_dim, hidden_dim = 16, 8, 32
    batch = 16

    key = jax.random.PRNGKey(0)
    k_obs, k_act, k_par = jax.random.split(key, 3)

    obs = jax.random.normal(k_obs, (batch, obs_dim), dtype=jnp.float32)
    action = jax.random.normal(k_act, (batch, action_dim), dtype=jnp.float32)
    params = init_qfunction_params(k_par, obs_dim, action_dim, hidden_dim)

    q = qfunction_forward(obs, action, params)
    q = jax.block_until_ready(q)

    q_ref = _ref_forward(obs, action, params)
    assert q.shape == (batch, 1)
    # bf16 matmul operands (f32 accumulation) -> loosened tolerance vs. f32 ref.
    assert jnp.allclose(q, q_ref, atol=5e-2, rtol=5e-2)

    print("KERNEL_OK")
</pallas_src>

<mosaic_0001>
module attributes {stable_mosaic.version = 11 : i64} {
  func.func @_qfunction_kernel(%arg0: i32, %arg1: memref<16x16xf32, #tpu.memory_space<vmem>>, %arg2: memref<16x8xf32, #tpu.memory_space<vmem>>, %arg3: memref<24x128xbf16, #tpu.memory_space<vmem>>, %arg4: memref<1x128xf32, #tpu.memory_space<vmem>>, %arg5: memref<128x128xbf16, #tpu.memory_space<vmem>>, %arg6: memref<1x128xf32, #tpu.memory_space<vmem>>, %arg7: memref<1x128xf32, #tpu.memory_space<vmem>>, %arg8: memref<1x1xf32, #tpu.memory_space<smem>>, %arg9: memref<1x16xf32, #tpu.memory_space<vmem>>, %arg10: memref<16x24xbf16, #tpu.memory_space<vmem>>) attributes {dimension_semantics = [#tpu.dimension_semantics<parallel>], iteration_bounds = array<i64: 1>, scalar_prefetch = 0 : i64, scratch_operands = 1 : i64, tpu.core_type = #tpu.core_type<tc>, window_params = [{transform_indices = @transform_0, window_bounds = array<i64: 16, 16>}, {transform_indices = @transform_1, window_bounds = array<i64: 16, 8>}, {pipeline_mode = #tpu.pipeline_mode<synchronous>, transform_indices = @transform_2, window_bounds = array<i64: 24, 128>}, {pipeline_mode = #tpu.pipeline_mode<synchronous>, transform_indices = @transform_3, window_bounds = array<i64: 1, 128>}, {pipeline_mode = #tpu.pipeline_mode<synchronous>, transform_indices = @transform_4, window_bounds = array<i64: 128, 128>}, {pipeline_mode = #tpu.pipeline_mode<synchronous>, transform_indices = @transform_5, window_bounds = array<i64: 1, 128>}, {pipeline_mode = #tpu.pipeline_mode<synchronous>, transform_indices = @transform_6, window_bounds = array<i64: 1, 128>}, {transform_indices = @transform_7, window_bounds = array<i64: 1, 1>}, {transform_indices = @transform_8, window_bounds = array<i64: 1, 16>}]} {
    %c0 = arith.constant 0 : index
    %c0_0 = arith.constant 0 : index
    %0 = vector.load %arg1[%c0, %c0_0] : memref<16x16xf32, #tpu.memory_space<vmem>>, vector<16x16xf32>
    %1 = arith.truncf %0 : vector<16x16xf32> to vector<16x16xbf16>
    %c0_1 = arith.constant 0 : index
    %c0_2 = arith.constant 0 : index
    %2 = vector.load %arg10[%c0_1, %c0_2] : memref<16x24xbf16, #tpu.memory_space<vmem>>, vector<16x16xbf16>
    tpu.vector_store %arg10[%c0_1, %c0_2], %1 {strides = array<i32>} : memref<16x24xbf16, #tpu.memory_space<vmem>>, vector<16x16xbf16>,
    %c0_3 = arith.constant 0 : index
    %c0_4 = arith.constant 0 : index
    %3 = vector.load %arg2[%c0_3, %c0_4] : memref<16x8xf32, #tpu.memory_space<vmem>>, vector<16x8xf32>
    %4 = arith.truncf %3 : vector<16x8xf32> to vector<16x8xbf16>
    %c0_5 = arith.constant 0 : index
    %c16 = arith.constant 16 : index
    %5 = vector.load %arg10[%c0_5, %c16] : memref<16x24xbf16, #tpu.memory_space<vmem>>, vector<16x8xbf16>
    tpu.vector_store %arg10[%c0_5, %c16], %4 {strides = array<i32>} : memref<16x24xbf16, #tpu.memory_space<vmem>>, vector<16x8xbf16>,
    %c0_6 = arith.constant 0 : index
    %c0_7 = arith.constant 0 : index
    %6 = vector.load %arg10[%c0_6, %c0_7] : memref<16x24xbf16, #tpu.memory_space<vmem>>, vector<16x24xbf16>
    %c0_8 = arith.constant 0 : index
    %c0_9 = arith.constant 0 : index
    %7 = vector.load %arg3[%c0_8, %c0_9] : memref<24x128xbf16, #tpu.memory_space<vmem>>, vector<24x128xbf16>
    %cst = arith.constant dense<0.000000e+00> : vector<16x128xf32>
    %8 = tpu.matmul %6, %7, %cst {dimension_numbers = #tpu.dot_dimension_numbers<[1], [0], [0], [1], [0, 0, 1, 1], [], []>} : vector<16x24xbf16>, vector<24x128xbf16>, vector<16x128xf32> -> vector<16x128xf32>
    %c0_10 = arith.constant 0 : index
    %c0_11 = arith.constant 0 : index
    %9 = vector.load %arg4[%c0_10, %c0_11] : memref<1x128xf32, #tpu.memory_space<vmem>>, vector<1x128xf32>
    %10 = vector.broadcast %9 : vector<1x128xf32> to vector<16x128xf32>
    %11 = arith.addf %8, %10 : vector<16x128xf32>
    %cst_12 = arith.constant 0.000000e+00 : f32
    %12 = vector.broadcast %cst_12 : f32 to vector<16x128xf32>
    %13 = arith.maximumf %11, %12 : vector<16x128xf32>
    %14 = arith.truncf %13 : vector<16x128xf32> to vector<16x128xbf16>
    %c0_13 = arith.constant 0 : index
    %c0_14 = arith.constant 0 : index
    %15 = vector.load %arg5[%c0_13, %c0_14] : memref<128x128xbf16, #tpu.memory_space<vmem>>, vector<128x128xbf16>
    %cst_15 = arith.constant dense<0.000000e+00> : vector<16x128xf32>
    %16 = tpu.matmul %14, %15, %cst_15 {dimension_numbers = #tpu.dot_dimension_numbers<[1], [0], [0], [1], [0, 0, 1, 1], [], []>} : vector<16x128xbf16>, vector<128x128xbf16>, vector<16x128xf32> -> vector<16x128xf32>
    %c0_16 = arith.constant 0 : index
    %c0_17 = arith.constant 0 : index
    %17 = vector.load %arg6[%c0_16, %c0_17] : memref<1x128xf32, #tpu.memory_space<vmem>>, vector<1x128xf32>
    %18 = vector.broadcast %17 : vector<1x128xf32> to vector<16x128xf32>
    %19 = arith.addf %16, %18 : vector<16x128xf32>
    %cst_18 = arith.constant 0.000000e+00 : f32
    %20 = vector.broadcast %cst_18 : f32 to vector<16x128xf32>
    %21 = arith.maximumf %19, %20 : vector<16x128xf32>
    %c0_19 = arith.constant 0 : index
    %c0_20 = arith.constant 0 : index
    %22 = vector.load %arg7[%c0_19, %c0_20] : memref<1x128xf32, #tpu.memory_space<vmem>>, vector<1x128xf32>
    %23 = vector.broadcast %22 : vector<1x128xf32> to vector<16x128xf32>
    %24 = arith.mulf %21, %23 : vector<16x128xf32>
    %cst_21 = arith.constant dense<0.000000e+00> : vector<16xf32>
    %25 = vector.multi_reduction <add>, %24, %cst_21 [1] : vector<16x128xf32> to vector<16xf32>
    %c0_22 = arith.constant 0 : index
    %c0_23 = arith.constant 0 : index
    %26 = memref.load %arg8[%c0_22, %c0_23] : memref<1x1xf32, #tpu.memory_space<smem>>
    %27 = vector.broadcast %26 : f32 to vector<16xf32>
    %28 = arith.addf %25, %27 : vector<16xf32>
    %29 = vector.shape_cast %28 : vector<16xf32> to vector<1x16xf32>
    %c0_24 = arith.constant 0 : index
    %c0_25 = arith.constant 0 : index
    %30 = vector.load %arg9[%c0_24, %c0_25] : memref<1x16xf32, #tpu.memory_space<vmem>>, vector<1x16xf32>
    tpu.vector_store %arg9[%c0_24, %c0_25], %29 {strides = array<i32>} : memref<1x16xf32, #tpu.memory_space<vmem>>, vector<1x16xf32>,
    return
  }
  func.func @transform_0(%arg0: i32) -> (i32, i32) {
    %c0_i32 = arith.constant 0 : i32
    %c0_i32_0 = arith.constant 0 : i32
    return %arg0, %c0_i32 : i32, i32
  }
  func.func @transform_1(%arg0: i32) -> (i32, i32) {
    %c0_i32 = arith.constant 0 : i32
    %c0_i32_0 = arith.constant 0 : i32
    return %arg0, %c0_i32 : i32, i32
  }
  func.func @transform_2(%arg0: i32) -> (i32, i32) {
    %c0_i32 = arith.constant 0 : i32
    %c0_i32_0 = arith.constant 0 : i32
    %c0_i32_1 = arith.constant 0 : i32
    return %c0_i32, %c0_i32_0 : i32, i32
  }
  func.func @transform_3(%arg0: i32) -> (i32, i32) {
    %c0_i32 = arith.constant 0 : i32
    %c0_i32_0 = arith.constant 0 : i32
    %c0_i32_1 = arith.constant 0 : i32
    return %c0_i32, %c0_i32_0 : i32, i32
  }
  func.func @transform_4(%arg0: i32) -> (i32, i32) {
    %c0_i32 = arith.constant 0 : i32
    %c0_i32_0 = arith.constant 0 : i32
    %c0_i32_1 = arith.constant 0 : i32
    return %c0_i32, %c0_i32_0 : i32, i32
  }
  func.func @transform_5(%arg0: i32) -> (i32, i32) {
    %c0_i32 = arith.constant 0 : i32
    %c0_i32_0 = arith.constant 0 : i32
    %c0_i32_1 = arith.constant 0 : i32
    return %c0_i32, %c0_i32_0 : i32, i32
  }
  func.func @transform_6(%arg0: i32) -> (i32, i32) {
    %c0_i32 = arith.constant 0 : i32
    %c0_i32_0 = arith.constant 0 : i32
    %c0_i32_1 = arith.constant 0 : i32
    return %c0_i32, %c0_i32_0 : i32, i32
  }
  func.func @transform_7(%arg0: i32) -> (i32, i32) {
    %c0_i32 = arith.constant 0 : i32
    %c0_i32_0 = arith.constant 0 : i32
    %c0_i32_1 = arith.constant 0 : i32
    return %c0_i32, %c0_i32_0 : i32, i32
  }
  func.func @transform_8(%arg0: i32) -> (i32, i32) {
    %c0_i32 = arith.constant 0 : i32
    %c0_i32_0 = arith.constant 0 : i32
    return %arg0, %c0_i32 : i32, i32
  }
}

</mosaic_0001>

<bundles_post_ra>
// kernel: tpu_custom_call.1
= control target key start
LH: loop header
LB: loop body
LE: loop exit
PB: predicated region body
PF: predicated region fallthrough
CT: control target
= control target key end

     0   :  { %14 = vsyncpa [#allocation5], 0  ;;  %s484_s0 = inlined_call_operand.vmem [shape: f32[16,16], index: 0, kind: input, shape index: {}]   ;;  %s485_s1 = inlined_call_operand.vmem [shape: f32[16,8], index: 1, kind: input, shape index: {}]   ;;  %s486_s2 = inlined_call_operand.hbm [shape: bf16[24,128], index: 2, kind: input, shape index: {}]   ;;  %s487_s3 = inlined_call_operand.vmem [shape: f32[1,128], index: 3, kind: input, shape index: {}]   ;;  %s488_s4 = inlined_call_operand.hbm [shape: bf16[128,128], index: 4, kind: input, shape index: {}]   ;;  %s489_s5 = inlined_call_operand.vmem [shape: f32[1,128], index: 5, kind: input, shape index: {}]   ;;  %s490_s6 = inlined_call_operand.vmem [shape: f32[1,128], index: 6, kind: input, shape index: {}]   ;;  %s491_s7 = inlined_call_operand.<no memory space> [shape: f32[1,1], index: 7, kind: input, shape index: {}]   ;;  %s492_s8 = inlined_call_operand.hbm [shape: f32[1,16], index: 8, kind: output, shape index: {}]  }
   0x1   :  { %15 = vsyncpa [#allocation8], 0 }
   0x2   :  { %16 = vsyncpa [#allocation6], 0  ;;  %s25_s29 = sshll.u32 %s486_s2, 4  ;;  %s400_s30 = smov [#allocation4]   ;;  %s26_s29 = int_to_ptr.hbm [resolvable:$true] %s25_s29 }
   0x3   :  { %s27_s9 = sshll.u32 %s400_s30, 4  ;;  %s40_s12 = sshll.u32 %s488_s4, 4  ;;  %s28_s9 = int_to_ptr.vmem [resolvable:$true] %s27_s9  ;;  %s41_s12 = int_to_ptr.hbm [resolvable:$true] %s40_s12 }
   0x4   :  { %s401_s13 = smov 64   ;;  %s402_s14 = smov 4  }
   0x5   :  { %33 = dma.hbm_to_vmem [thread:$0]  %s26_s29, 192, %s28_s9, [#allocation5], %s401_s13, %s401_s13, %s402_s14  }
   0x6   :  { %s403_s15 = smov [#allocation7]  }
   0x7   :  { %s42_s16 = sshll.u32 %s403_s15, 4  ;;  %s43_s16 = int_to_ptr.vmem [resolvable:$true] %s42_s16 }
   0x8   :  { %48 = dma.hbm_to_vmem [thread:$0]  %s41_s12, 1024, %s43_s16, [#allocation8], %s401_s13, %s401_s13, %s402_s14  }
   0x9   :  { %394 = dma.done.wait [#allocation5], 192  }
   0xa   :  { %395 = vsyncadd [#allocation5], 4294967104 }
   0xb   :  { %396 = dma.done.wait [#allocation8], 1024  }
   0xc   :  { %397 = vsyncadd [#allocation8], 4294966272  ;;  %v71_v0 = vld [vmem:[%s485_s1] sm:$0xff]  ;;  %s404_s18 = smov 16   ;;  %v72_v2 = vld [vmem:[%s485_s1 + $0x8] sm:$0xff]  ;;  %vm68_vm0 = vcmask 125952   ;;  %v234_v43 = vlaneseq  ;;  %v229_v44 = vstv %s491_s7 }
   0xd   :  { %v73_v1 = vpack.c.bf16 %v71_v0, %v71_v0  ;;  %v74_v3 = vpack.c.bf16 %v72_v2, %v72_v2  ;;  %v64_v4 = vld [vmem:[%s484_s0] sm:$0xff]  ;;  %v65_v6 = vld [vmem:[%s484_s0 + $0x8] sm:$0xff]  ;;  %v90_v7 = vld [vmem:[#allocation4 + $0x8] sm:$0xf]  ;;  %vm113_vm1 = vcmask 1043456   ;;  %vm83_vm2 = vcmask 191616  }
   0xe   :  { %v66_v5 = vpack.c.bf16 %v64_v4, %v64_v4  ;;  %v67_v8 = vpack.c.bf16 %v65_v6, %v65_v6  ;;  %v105_v9 = vunpack.c.l.b16 %v90_v7  ;;  %v304_v12 = vld [vmem:[#allocation4] sm:$0xff]  ;;  %v310_v15 = vld [vmem:[#allocation7 + $0x28] sm:$0xff]  ;;  %v309_v16 = vld [vmem:[#allocation7 + $0x20] sm:$0xff]  ;;  %vm109_vm3 = vcmask 195584   ;;  %s251_s9 = sshll.u32 %s492_s8, 4  ;;  %s252_s9 = int_to_ptr.hbm [resolvable:$true] %s251_s9 }
   0xf   :  { %77 = vrot.lane.b32.xlu0 %v73_v1, %s404_s18  ;;  %v312_v13 = vld [vmem:[#allocation7 + $0x38] sm:$0xff]  ;;  %v311_v14 = vld [vmem:[#allocation7 + $0x30] sm:$0xff]  ;;  %v306_v22 = vld [vmem:[#allocation7 + $0x8] sm:$0xff]  ;;  %v235_v45 = vand.u32 127, %v234_v43  ;;  %vm239_vm4 = vcmask 130112   ;;  %vm242_vm5 = vcmask 122880  }
  0x10   :  { %69 = vst.msk [vmem:[#allocation2] sm:$0xf] %vm68_vm0, %v66_v5  ;;  %v107_v10 = vpack.c.b16 %v105_v9, %v105_v9  ;;  %202 = vmatpush.bf16.msra.mxu1 %v312_v13  ;;  %v308_v20 = vld [vmem:[#allocation7 + $0x18] sm:$0xff]  ;;  %v307_v21 = vld [vmem:[#allocation7 + $0x10] sm:$0xff]  ;;  %v305_v23 = vld [vmem:[#allocation7] sm:$0xff] }
  0x11   :  { %70 = vst.msk [vmem:[#allocation2 + $0x4] sm:$0xf] %vm68_vm0, %v67_v8  ;;  %v319_v25 = vld [vmem:[%s487_s3] ss:$0 sm:$0xff]  ;;  %v237_v47 = vadd.s32 4294967288, %v235_v45 }
  0x12   :  { %v115_v11 = vsel %vm113_vm1, %v107_v10, 0  ;;  %v320_v32 = vld [vmem:[%s489_s5] ss:$0 sm:$0xff]  ;;  %s405_s5 = smov [#allocation9]  }
  0x13   :  { %123 = vmatpush.bf16.msra.mxu0 %v115_v11  ;;  %v321_v35 = vld [vmem:[%s490_s6] ss:$0 sm:$0xff]  ;;  %s249_s6 = sshll.u32 %s405_s5, 4  ;;  %s250_s6 = int_to_ptr.vmem [resolvable:$true] %s249_s6 }
  0x14   :  { %203 = vmatpush.bf16.msra.mxu1 %v311_v14 }
  0x17   :  { %79 = vrot.lane.b32.xlu0 %v74_v3, %s404_s18  ;;  %124 = vmatpush.bf16.msra.mxu0 %v304_v12 }
  0x18   :  { %204 = vmatpush.bf16.msra.mxu1 %v310_v15 }
  0x1c   :  { %205 = vmatpush.bf16.msra.mxu1 %v309_v16 }
  0x20   :  { %206 = vmatpush.bf16.msra.mxu1 %v308_v20 }
  0x24   :  { %207 = vmatpush.bf16.msra.mxu1 %v307_v21 }
  0x28   :  { %208 = vmatpush.bf16.msra.mxu1 %v306_v22 }
  0x2c   :  { %209 = vmatpush.bf16.msra.mxu1 %v305_v23 }
  0x81   :  { %v78_v17 = vpop.permute.xlu0 %77 }
  0x82   :  { %84 = vst.msk [vmem:[#allocation2] sm:$0xf] %vm83_vm2, %v78_v17 }
  0x89   :  { %v80_v18 = vpop.permute.xlu0 %79 }
  0x8a   :  { %85 = vst.msk [vmem:[#allocation2 + $0x4] sm:$0xf] %vm83_vm2, %v80_v18 }
  0x91   :  { %v303_v19 = vld [vmem:[#allocation2] sm:$0xff] }
  0x92   :  { %270 = vmatmul.msk.bf16.vlgmr.msra.gmra.mxu0 %vm109_vm3, %v303_v19 }
 0x10f   :  { %v126_v24 = vpop.f32.mrf.mxu0 }
 0x110   :  { %v127_v26 = vadd.f32 %v319_v25, %v126_v24 }
 0x112   :  { %v131_v29 = vmax.f32 %v127_v26, 0.0 }
 0x117   :  { %v128_v27 = vpop.f32.mrf.mxu0 }
 0x118   :  { %v129_v28 = vadd.f32 %v319_v25, %v128_v27 }
 0x11a   :  { %v132_v30 = vmax.f32 %v129_v28, 0.0 }
 0x11c   :  { %v133_v31 = vpack.c.bf16 %v132_v30, %v131_v29 }
 0x11e   :  { %210 = vmatmul.bf16.vlgmr.msra.gmra.mxu1 %v133_v31 }
 0x19b   :  { %v211_v33 = vpop.f32.mrf.mxu1 }
 0x19c   :  { %v212_v34 = vadd.f32 %v320_v32, %v211_v33 }
 0x19e   :  { %v216_v36 = vmax.f32 %v212_v34, 0.0 }
 0x1a0   :  { %v222_v37 = vmul.f32 %v321_v35, %v216_v36 }
 0x1a2   :  { %224 = vadd.xlane.f32.xlu1 %v222_v37 }
 0x1a3   :  { %v213_v38 = vpop.f32.mrf.mxu1 }
 0x1a4   :  { %v214_v39 = vadd.f32 %v320_v32, %v213_v38 }
 0x1a6   :  { %v217_v40 = vmax.f32 %v214_v39, 0.0 }
 0x1a8   :  { %v223_v41 = vmul.f32 %v321_v35, %v217_v40 }
 0x1aa   :  { %226 = vadd.xlane.f32.xlu1 %v223_v41 }
 0x215   :  { %v225_v42 = vpop.xlane.xlu1 %224 }
 0x216   :  { %v230_v46 = vadd.f32 %v229_v44, %v225_v42 }
 0x218   :  { %v236_v50 = vperm.slane %v230_v46, %v235_v45 }
 0x21d   :  { %v227_v48 = vpop.xlane.xlu1 %226 }
 0x21e   :  { %v231_v49 = vadd.f32 %v229_v44, %v227_v48 }
 0x220   :  { %v238_v51 = vperm.slane %v231_v49, %v237_v47 }
 0x222   :  { %v240_v52 = vsel %vm239_vm4, %v238_v51, %v236_v50 }
 0x223   :  { %243 = vst.msk [vmem:[#allocation9] sm:$0x1] %vm242_vm5, %v240_v52 }
 0x224   :  { %254 = dma.vmem_to_hbm [thread:$0]  %s250_s6, 16, %s252_s9, [#allocation6]  }
 0x225   :  { %398 = dma.done.wait [#allocation6], 16  }
 0x226   :  { %399 = vsyncadd [#allocation6], 4294967280 }
 0x227   :  { %259 = vsyncpa [#allocation5], 1 }
 0x228   :  { %260 = vsyncpa [#allocation8], 1 }
 0x229   :  { %261 = vsyncpa [#allocation6], 1 }

</bundles_post_ra>
